<compile_context>
chip_gen: v7x
topology: tpu7x:2x2x1
jax: 0.10.0
libtpu: 0.0.40
codegen_flags: <defaults>
</compile_context>

<pallas_src>
import functools

import jax
import jax.numpy as jnp
from jax.experimental import pallas as pl
from jax.experimental.pallas import tpu as pltpu


def _lstm_kernel(x_ref, p_ref, out_ref, *, T, B, H, E):
    """Whole-sequence LSTM in one kernel invocation (no grid).

    x_ref   : (T*B, E)   bf16 time-major, batch-flattened input
    p_ref   : (E+H+8, 4H) f32 packed params:
                rows [0, E)    = W_ih^T  (g-gate columns pre-scaled by 2)
                rows [E, E+H)  = W_hh^T  (g-gate columns pre-scaled by 2)
                row  E+H       = b_ih + b_hh (g-gate columns pre-scaled by 2)
                remaining rows = zero padding (sublane alignment)
    out_ref : (B, T*H)   f32 lane-dense output slab; cols t*H:(t+1)*H hold h_t
    """
    p = p_ref[...]                                   # (E+H+8, 4H) f32, one load
    wih = p[0:E, :].astype(jnp.bfloat16)             # (E, 4H) bf16 MXU operand
    whh = p[E:E + H, :].astype(jnp.bfloat16)         # (H, 4H) bf16 MXU operand
    bias = p[E + H:E + H + 1, :]                     # (1, 4H) f32

    # Hoisted input projection: one bf16 MXU matmul (f32 accumulation) for all
    # time steps, plus the combined bias.
    xw = (
        jnp.dot(x_ref[...], wih, preferred_element_type=jnp.float32) + bias
    )  # (T*B, 4H) f32

    h = jnp.zeros((B, H), jnp.float32)
    c = jnp.zeros((B, H), jnp.float32)
    hs = []

    # Static, fully unrolled recurrence (T small and known at trace time).
    for t in range(T):
        gates = xw[t * B:(t + 1) * B, :] + jnp.dot(
            h.astype(jnp.bfloat16), whh, preferred_element_type=jnp.float32
        )  # (B, 4H) f32

        # Single whole-vreg sigmoid; the g-gate tanh is recovered via
        # tanh(x) = 2*sigmoid(2x) - 1 (the 2x is folded into the packed params).
        sig = jax.nn.sigmoid(gates)
        i = sig[:, 0 * H:1 * H]
        f = sig[:, 1 * H:2 * H]
        g = 2.0 * sig[:, 2 * H:3 * H] - 1.0
        o = sig[:, 3 * H:4 * H]

        c = f * c + i * g
        h = o * jnp.tanh(c)
        hs.append(h)

    # One lane-dense (B, T*H) unmasked store.
    out_ref[...] = jnp.concatenate(hs, axis=-1).astype(out_ref.dtype)


def prepare_lstm_params(w_ih, w_hh, b_ih, b_hh):
    """One-time (outside the hot path) weight prep.

    PyTorch layout in: w_ih (4H, E), w_hh (4H, H), b_ih/b_hh (4H,).
    Returns a single packed (E+H+8, 4H) f32 slab with pre-transposed weights,
    combined bias, and the g-gate 2x scale folded in.
    """
    H4, E = w_ih.shape
    H = w_hh.shape[1]
    # Fold the 2x needed for tanh(x) = 2*sigmoid(2x) - 1 into the g block.
    scale = jnp.ones((H4,), jnp.float32).at[2 * H:3 * H].set(2.0)
    wih_t = jnp.transpose(w_ih, (1, 0)) * scale[None, :]   # (E, 4H)
    whh_t = jnp.transpose(w_hh, (1, 0)) * scale[None, :]   # (H, 4H)
    bias = (b_ih + b_hh) * scale                            # (4H,)

    packed = jnp.zeros((E + H + 8, H4), jnp.float32)
    packed = packed.at[0:E, :].set(wih_t)
    packed = packed.at[E:E + H, :].set(whh_t)
    packed = packed.at[E + H, :].set(bias)
    return packed


@jax.jit
def vanilla_lstm_forward(x, packed_params):
    """x: (B, T, E) float32; packed_params from prepare_lstm_params.
       Returns (out (B, T, H), hn (B, H)) — matching Vanilla_lstm.forward."""
    B, T, E = x.shape
    H = packed_params.shape[1] // 4

    # Only remaining wrapper-side glue: time-major flatten + bf16 cast of x
    # (one small fused XLA op).
    x_tm = jnp.transpose(x, (1, 0, 2)).reshape(T * B, E).astype(jnp.bfloat16)

    out_flat = pl.pallas_call(
        functools.partial(_lstm_kernel, T=T, B=B, H=H, E=E),
        out_shape=jax.ShapeDtypeStruct((B, T * H), jnp.float32),
        in_specs=[
            pl.BlockSpec(memory_space=pltpu.MemorySpace.VMEM),  # x (T*B, E)
            pl.BlockSpec(memory_space=pltpu.MemorySpace.VMEM),  # packed params
        ],
        out_specs=pl.BlockSpec(memory_space=pltpu.MemorySpace.VMEM),
    )(x_tm, packed_params)

    out = out_flat.reshape(B, T, H)   # batch_first (B, T, H)
    hn = out[:, -1, :]                # final hidden state == last time step
    return out, hn


def _reference_lstm(x, w_ih, w_hh, b_ih, b_hh):
    """Pure-JAX f32 reference (PyTorch nn.LSTM semantics, zero init state)."""
    B, T, E = x.shape
    H = w_hh.shape[1]

    def step(carry, x_t):
        h, c = carry
        gates = x_t @ w_ih.T + b_ih + h @ w_hh.T + b_hh
        i = jax.nn.sigmoid(gates[:, 0 * H:1 * H])
        f = jax.nn.sigmoid(gates[:, 1 * H:2 * H])
        g = jnp.tanh(gates[:, 2 * H:3 * H])
        o = jax.nn.sigmoid(gates[:, 3 * H:4 * H])
        c = f * c + i * g
        h = o * jnp.tanh(c)
        return (h, c), h

    h0 = jnp.zeros((B, H), jnp.float32)
    c0 = jnp.zeros((B, H), jnp.float32)
    (hn, _), out_tm = jax.lax.scan(step, (h0, c0), jnp.transpose(x, (1, 0, 2)))
    return jnp.transpose(out_tm, (1, 0, 2)), hn


if __name__ == "__main__":
    # Module config: embed_dim=16, model_size=32, output_size=8.
    EMBED, HIDDEN, OUTPUT = 16, 32, 8
    B, T = 8, 8

    key = jax.random.PRNGKey(0)
    kx, k1, k2, k3, k4 = jax.random.split(key, 5)

    # Deterministic parameter init (PyTorch LSTM param shapes).
    scale = 1.0 / jnp.sqrt(HIDDEN)
    w_ih = jax.random.uniform(k1, (4 * HIDDEN, EMBED), jnp.float32, -scale, scale)
    w_hh = jax.random.uniform(k2, (4 * HIDDEN, HIDDEN), jnp.float32, -scale, scale)
    b_ih = jax.random.uniform(k3, (4 * HIDDEN,), jnp.float32, -scale, scale)
    b_hh = jax.random.uniform(k4, (4 * HIDDEN,), jnp.float32, -scale, scale)
    # self.fl = nn.Linear(model_size, output_size) is never used in forward(),
    # so it is intentionally not part of the kernel.

    x = jax.random.normal(kx, (B, T, EMBED), jnp.float32)

    # One-time parameter packing (pre-transpose, combined bias, g-gate 2x fold).
    packed_params = jax.block_until_ready(
        prepare_lstm_params(w_ih, w_hh, b_ih, b_hh))

    out, hn = vanilla_lstm_forward(x, packed_params)
    out = jax.block_until_ready(out)
    hn = jax.block_until_ready(hn)

    out_ref, hn_ref = _reference_lstm(x, w_ih, w_hh, b_ih, b_hh)
    assert out.shape == (B, T, HIDDEN) and hn.shape == (B, HIDDEN)
    # bf16 MXU operands (f32 accumulation) -> loosened tolerance vs f32 ref.
    assert jnp.allclose(out, out_ref, atol=5e-2, rtol=5e-2)
    assert jnp.allclose(hn, hn_ref, atol=5e-2, rtol=5e-2)

    print("KERNEL_OK")
</pallas_src>

<mosaic_0001>
module attributes {stable_mosaic.version = 11 : i64} {
  func.func @_lstm_kernel(%arg0: memref<64x16xbf16, #tpu.memory_space<vmem>>, %arg1: memref<56x128xf32, #tpu.memory_space<vmem>>, %arg2: memref<8x256xf32, #tpu.memory_space<vmem>>) attributes {dimension_semantics = [], scalar_prefetch = 0 : i64, scratch_operands = 0 : i64, tpu.core_type = #tpu.core_type<tc>} {
    %c0 = arith.constant 0 : index
    %c0_0 = arith.constant 0 : index
    %0 = vector.load %arg1[%c0, %c0_0] : memref<56x128xf32, #tpu.memory_space<vmem>>, vector<56x128xf32>
    %1 = vector.extract_strided_slice %0 {offsets = [0, 0], sizes = [16, 128], strides = [1, 1]} : vector<56x128xf32> to vector<16x128xf32>
    %2 = arith.truncf %1 : vector<16x128xf32> to vector<16x128xbf16>
    %3 = vector.extract_strided_slice %0 {offsets = [16, 0], sizes = [32, 128], strides = [1, 1]} : vector<56x128xf32> to vector<32x128xf32>
    %4 = arith.truncf %3 : vector<32x128xf32> to vector<32x128xbf16>
    %5 = vector.extract_strided_slice %0 {offsets = [48, 0], sizes = [1, 128], strides = [1, 1]} : vector<56x128xf32> to vector<1x128xf32>
    %c0_1 = arith.constant 0 : index
    %c0_2 = arith.constant 0 : index
    %6 = vector.load %arg0[%c0_1, %c0_2] : memref<64x16xbf16, #tpu.memory_space<vmem>>, vector<64x16xbf16>
    %cst = arith.constant dense<0.000000e+00> : vector<64x128xf32>
    %7 = tpu.matmul %6, %2, %cst {dimension_numbers = #tpu.dot_dimension_numbers<[1], [0], [0], [1], [0, 0, 1, 1], [], []>} : vector<64x16xbf16>, vector<16x128xbf16>, vector<64x128xf32> -> vector<64x128xf32>
    %8 = vector.broadcast %5 : vector<1x128xf32> to vector<64x128xf32>
    %9 = arith.addf %7, %8 : vector<64x128xf32>
    %cst_3 = arith.constant 0.000000e+00 : f32
    %10 = vector.broadcast %cst_3 : f32 to vector<8x32xf32>
    %cst_4 = arith.constant 0.000000e+00 : f32
    %11 = vector.broadcast %cst_4 : f32 to vector<8x32xf32>
    %12 = vector.extract_strided_slice %9 {offsets = [0, 0], sizes = [8, 128], strides = [1, 1]} : vector<64x128xf32> to vector<8x128xf32>
    %13 = arith.truncf %10 : vector<8x32xf32> to vector<8x32xbf16>
    %cst_5 = arith.constant dense<0.000000e+00> : vector<8x128xf32>
    %14 = tpu.matmul %13, %4, %cst_5 {dimension_numbers = #tpu.dot_dimension_numbers<[1], [0], [0], [1], [0, 0, 1, 1], [], []>} : vector<8x32xbf16>, vector<32x128xbf16>, vector<8x128xf32> -> vector<8x128xf32>
    %15 = arith.addf %12, %14 : vector<8x128xf32>
    %16 = arith.negf %15 : vector<8x128xf32>
    %17 = math.exp %16 : vector<8x128xf32>
    %cst_6 = arith.constant 1.000000e+00 : f32
    %18 = vector.broadcast %cst_6 : f32 to vector<8x128xf32>
    %19 = arith.addf %18, %17 : vector<8x128xf32>
    %20 = arith.divf %18, %19 : vector<8x128xf32>
    %21 = vector.extract_strided_slice %20 {offsets = [0, 0], sizes = [8, 32], strides = [1, 1]} : vector<8x128xf32> to vector<8x32xf32>
    %22 = vector.extract_strided_slice %20 {offsets = [0, 32], sizes = [8, 32], strides = [1, 1]} : vector<8x128xf32> to vector<8x32xf32>
    %23 = vector.extract_strided_slice %20 {offsets = [0, 64], sizes = [8, 32], strides = [1, 1]} : vector<8x128xf32> to vector<8x32xf32>
    %cst_7 = arith.constant 2.000000e+00 : f32
    %24 = vector.broadcast %cst_7 : f32 to vector<8x32xf32>
    %25 = arith.mulf %24, %23 : vector<8x32xf32>
    %cst_8 = arith.constant 1.000000e+00 : f32
    %26 = vector.broadcast %cst_8 : f32 to vector<8x32xf32>
    %27 = arith.subf %25, %26 : vector<8x32xf32>
    %28 = vector.extract_strided_slice %20 {offsets = [0, 96], sizes = [8, 32], strides = [1, 1]} : vector<8x128xf32> to vector<8x32xf32>
    %29 = arith.mulf %22, %11 : vector<8x32xf32>
    %30 = arith.mulf %21, %27 : vector<8x32xf32>
    %31 = arith.addf %29, %30 : vector<8x32xf32>
    %32 = math.tanh %31 : vector<8x32xf32>
    %33 = arith.mulf %28, %32 : vector<8x32xf32>
    %34 = vector.extract_strided_slice %9 {offsets = [8, 0], sizes = [8, 128], strides = [1, 1]} : vector<64x128xf32> to vector<8x128xf32>
    %35 = arith.truncf %33 : vector<8x32xf32> to vector<8x32xbf16>
    %cst_9 = arith.constant dense<0.000000e+00> : vector<8x128xf32>
    %36 = tpu.matmul %35, %4, %cst_9 {dimension_numbers = #tpu.dot_dimension_numbers<[1], [0], [0], [1], [0, 0, 1, 1], [], []>} : vector<8x32xbf16>, vector<32x128xbf16>, vector<8x128xf32> -> vector<8x128xf32>
    %37 = arith.addf %34, %36 : vector<8x128xf32>
    %38 = arith.negf %37 : vector<8x128xf32>
    %39 = math.exp %38 : vector<8x128xf32>
    %cst_10 = arith.constant 1.000000e+00 : f32
    %40 = vector.broadcast %cst_10 : f32 to vector<8x128xf32>
    %41 = arith.addf %40, %39 : vector<8x128xf32>
    %42 = arith.divf %40, %41 : vector<8x128xf32>
    %43 = vector.extract_strided_slice %42 {offsets = [0, 0], sizes = [8, 32], strides = [1, 1]} : vector<8x128xf32> to vector<8x32xf32>
    %44 = vector.extract_strided_slice %42 {offsets = [0, 32], sizes = [8, 32], strides = [1, 1]} : vector<8x128xf32> to vector<8x32xf32>
    %45 = vector.extract_strided_slice %42 {offsets = [0, 64], sizes = [8, 32], strides = [1, 1]} : vector<8x128xf32> to vector<8x32xf32>
    %cst_11 = arith.constant 2.000000e+00 : f32
    %46 = vector.broadcast %cst_11 : f32 to vector<8x32xf32>
    %47 = arith.mulf %46, %45 : vector<8x32xf32>
    %cst_12 = arith.constant 1.000000e+00 : f32
    %48 = vector.broadcast %cst_12 : f32 to vector<8x32xf32>
    %49 = arith.subf %47, %48 : vector<8x32xf32>
    %50 = vector.extract_strided_slice %42 {offsets = [0, 96], sizes = [8, 32], strides = [1, 1]} : vector<8x128xf32> to vector<8x32xf32>
    %51 = arith.mulf %44, %31 : vector<8x32xf32>
    %52 = arith.mulf %43, %49 : vector<8x32xf32>
    %53 = arith.addf %51, %52 : vector<8x32xf32>
    %54 = math.tanh %53 : vector<8x32xf32>
    %55 = arith.mulf %50, %54 : vector<8x32xf32>
    %56 = vector.extract_strided_slice %9 {offsets = [16, 0], sizes = [8, 128], strides = [1, 1]} : vector<64x128xf32> to vector<8x128xf32>
    %57 = arith.truncf %55 : vector<8x32xf32> to vector<8x32xbf16>
    %cst_13 = arith.constant dense<0.000000e+00> : vector<8x128xf32>
    %58 = tpu.matmul %57, %4, %cst_13 {dimension_numbers = #tpu.dot_dimension_numbers<[1], [0], [0], [1], [0, 0, 1, 1], [], []>} : vector<8x32xbf16>, vector<32x128xbf16>, vector<8x128xf32> -> vector<8x128xf32>
    %59 = arith.addf %56, %58 : vector<8x128xf32>
    %60 = arith.negf %59 : vector<8x128xf32>
    %61 = math.exp %60 : vector<8x128xf32>
    %cst_14 = arith.constant 1.000000e+00 : f32
    %62 = vector.broadcast %cst_14 : f32 to vector<8x128xf32>
    %63 = arith.addf %62, %61 : vector<8x128xf32>
    %64 = arith.divf %62, %63 : vector<8x128xf32>
    %65 = vector.extract_strided_slice %64 {offsets = [0, 0], sizes = [8, 32], strides = [1, 1]} : vector<8x128xf32> to vector<8x32xf32>
    %66 = vector.extract_strided_slice %64 {offsets = [0, 32], sizes = [8, 32], strides = [1, 1]} : vector<8x128xf32> to vector<8x32xf32>
    %67 = vector.extract_strided_slice %64 {offsets = [0, 64], sizes = [8, 32], strides = [1, 1]} : vector<8x128xf32> to vector<8x32xf32>
    %cst_15 = arith.constant 2.000000e+00 : f32
    %68 = vector.broadcast %cst_15 : f32 to vector<8x32xf32>
    %69 = arith.mulf %68, %67 : vector<8x32xf32>
    %cst_16 = arith.constant 1.000000e+00 : f32
    %70 = vector.broadcast %cst_16 : f32 to vector<8x32xf32>
    %71 = arith.subf %69, %70 : vector<8x32xf32>
    %72 = vector.extract_strided_slice %64 {offsets = [0, 96], sizes = [8, 32], strides = [1, 1]} : vector<8x128xf32> to vector<8x32xf32>
    %73 = arith.mulf %66, %53 : vector<8x32xf32>
    %74 = arith.mulf %65, %71 : vector<8x32xf32>
    %75 = arith.addf %73, %74 : vector<8x32xf32>
    %76 = math.tanh %75 : vector<8x32xf32>
    %77 = arith.mulf %72, %76 : vector<8x32xf32>
    %78 = vector.extract_strided_slice %9 {offsets = [24, 0], sizes = [8, 128], strides = [1, 1]} : vector<64x128xf32> to vector<8x128xf32>
    %79 = arith.truncf %77 : vector<8x32xf32> to vector<8x32xbf16>
    %cst_17 = arith.constant dense<0.000000e+00> : vector<8x128xf32>
    %80 = tpu.matmul %79, %4, %cst_17 {dimension_numbers = #tpu.dot_dimension_numbers<[1], [0], [0], [1], [0, 0, 1, 1], [], []>} : vector<8x32xbf16>, vector<32x128xbf16>, vector<8x128xf32> -> vector<8x128xf32>
    %81 = arith.addf %78, %80 : vector<8x128xf32>
    %82 = arith.negf %81 : vector<8x128xf32>
    %83 = math.exp %82 : vector<8x128xf32>
    %cst_18 = arith.constant 1.000000e+00 : f32
    %84 = vector.broadcast %cst_18 : f32 to vector<8x128xf32>
    %85 = arith.addf %84, %83 : vector<8x128xf32>
    %86 = arith.divf %84, %85 : vector<8x128xf32>
    %87 = vector.extract_strided_slice %86 {offsets = [0, 0], sizes = [8, 32], strides = [1, 1]} : vector<8x128xf32> to vector<8x32xf32>
    %88 = vector.extract_strided_slice %86 {offsets = [0, 32], sizes = [8, 32], strides = [1, 1]} : vector<8x128xf32> to vector<8x32xf32>
    %89 = vector.extract_strided_slice %86 {offsets = [0, 64], sizes = [8, 32], strides = [1, 1]} : vector<8x128xf32> to vector<8x32xf32>
    %cst_19 = arith.constant 2.000000e+00 : f32
    %90 = vector.broadcast %cst_19 : f32 to vector<8x32xf32>
    %91 = arith.mulf %90, %89 : vector<8x32xf32>
    %cst_20 = arith.constant 1.000000e+00 : f32
    %92 = vector.broadcast %cst_20 : f32 to vector<8x32xf32>
    %93 = arith.subf %91, %92 : vector<8x32xf32>
    %94 = vector.extract_strided_slice %86 {offsets = [0, 96], sizes = [8, 32], strides = [1, 1]} : vector<8x128xf32> to vector<8x32xf32>
    %95 = arith.mulf %88, %75 : vector<8x32xf32>
    %96 = arith.mulf %87, %93 : vector<8x32xf32>
    %97 = arith.addf %95, %96 : vector<8x32xf32>
    %98 = math.tanh %97 : vector<8x32xf32>
    %99 = arith.mulf %94, %98 : vector<8x32xf32>
    %100 = vector.extract_strided_slice %9 {offsets = [32, 0], sizes = [8, 128], strides = [1, 1]} : vector<64x128xf32> to vector<8x128xf32>
    %101 = arith.truncf %99 : vector<8x32xf32> to vector<8x32xbf16>
    %cst_21 = arith.constant dense<0.000000e+00> : vector<8x128xf32>
    %102 = tpu.matmul %101, %4, %cst_21 {dimension_numbers = #tpu.dot_dimension_numbers<[1], [0], [0], [1], [0, 0, 1, 1], [], []>} : vector<8x32xbf16>, vector<32x128xbf16>, vector<8x128xf32> -> vector<8x128xf32>
    %103 = arith.addf %100, %102 : vector<8x128xf32>
    %104 = arith.negf %103 : vector<8x128xf32>
    %105 = math.exp %104 : vector<8x128xf32>
    %cst_22 = arith.constant 1.000000e+00 : f32
    %106 = vector.broadcast %cst_22 : f32 to vector<8x128xf32>
    %107 = arith.addf %106, %105 : vector<8x128xf32>
    %108 = arith.divf %106, %107 : vector<8x128xf32>
    %109 = vector.extract_strided_slice %108 {offsets = [0, 0], sizes = [8, 32], strides = [1, 1]} : vector<8x128xf32> to vector<8x32xf32>
    %110 = vector.extract_strided_slice %108 {offsets = [0, 32], sizes = [8, 32], strides = [1, 1]} : vector<8x128xf32> to vector<8x32xf32>
    %111 = vector.extract_strided_slice %108 {offsets = [0, 64], sizes = [8, 32], strides = [1, 1]} : vector<8x128xf32> to vector<8x32xf32>
    %cst_23 = arith.constant 2.000000e+00 : f32
    %112 = vector.broadcast %cst_23 : f32 to vector<8x32xf32>
    %113 = arith.mulf %112, %111 : vector<8x32xf32>
    %cst_24 = arith.constant 1.000000e+00 : f32
    %114 = vector.broadcast %cst_24 : f32 to vector<8x32xf32>
    %115 = arith.subf %113, %114 : vector<8x32xf32>
    %116 = vector.extract_strided_slice %108 {offsets = [0, 96], sizes = [8, 32], strides = [1, 1]} : vector<8x128xf32> to vector<8x32xf32>
    %117 = arith.mulf %110, %97 : vector<8x32xf32>
    %118 = arith.mulf %109, %115 : vector<8x32xf32>
    %119 = arith.addf %117, %118 : vector<8x32xf32>
    %120 = math.tanh %119 : vector<8x32xf32>
    %121 = arith.mulf %116, %120 : vector<8x32xf32>
    %122 = vector.extract_strided_slice %9 {offsets = [40, 0], sizes = [8, 128], strides = [1, 1]} : vector<64x128xf32> to vector<8x128xf32>
    %123 = arith.truncf %121 : vector<8x32xf32> to vector<8x32xbf16>
    %cst_25 = arith.constant dense<0.000000e+00> : vector<8x128xf32>
    %124 = tpu.matmul %123, %4, %cst_25 {dimension_numbers = #tpu.dot_dimension_numbers<[1], [0], [0], [1], [0, 0, 1, 1], [], []>} : vector<8x32xbf16>, vector<32x128xbf16>, vector<8x128xf32> -> vector<8x128xf32>
    %125 = arith.addf %122, %124 : vector<8x128xf32>
    %126 = arith.negf %125 : vector<8x128xf32>
    %127 = math.exp %126 : vector<8x128xf32>
    %cst_26 = arith.constant 1.000000e+00 : f32
    %128 = vector.broadcast %cst_26 : f32 to vector<8x128xf32>
    %129 = arith.addf %128, %127 : vector<8x128xf32>
    %130 = arith.divf %128, %129 : vector<8x128xf32>
    %131 = vector.extract_strided_slice %130 {offsets = [0, 0], sizes = [8, 32], strides = [1, 1]} : vector<8x128xf32> to vector<8x32xf32>
    %132 = vector.extract_strided_slice %130 {offsets = [0, 32], sizes = [8, 32], strides = [1, 1]} : vector<8x128xf32> to vector<8x32xf32>
    %133 = vector.extract_strided_slice %130 {offsets = [0, 64], sizes = [8, 32], strides = [1, 1]} : vector<8x128xf32> to vector<8x32xf32>
    %cst_27 = arith.constant 2.000000e+00 : f32
    %134 = vector.broadcast %cst_27 : f32 to vector<8x32xf32>
    %135 = arith.mulf %134, %133 : vector<8x32xf32>
    %cst_28 = arith.constant 1.000000e+00 : f32
    %136 = vector.broadcast %cst_28 : f32 to vector<8x32xf32>
    %137 = arith.subf %135, %136 : vector<8x32xf32>
    %138 = vector.extract_strided_slice %130 {offsets = [0, 96], sizes = [8, 32], strides = [1, 1]} : vector<8x128xf32> to vector<8x32xf32>
    %139 = arith.mulf %132, %119 : vector<8x32xf32>
    %140 = arith.mulf %131, %137 : vector<8x32xf32>
    %141 = arith.addf %139, %140 : vector<8x32xf32>
    %142 = math.tanh %141 : vector<8x32xf32>
    %143 = arith.mulf %138, %142 : vector<8x32xf32>
    %144 = vector.extract_strided_slice %9 {offsets = [48, 0], sizes = [8, 128], strides = [1, 1]} : vector<64x128xf32> to vector<8x128xf32>
    %145 = arith.truncf %143 : vector<8x32xf32> to vector<8x32xbf16>
    %cst_29 = arith.constant dense<0.000000e+00> : vector<8x128xf32>
    %146 = tpu.matmul %145, %4, %cst_29 {dimension_numbers = #tpu.dot_dimension_numbers<[1], [0], [0], [1], [0, 0, 1, 1], [], []>} : vector<8x32xbf16>, vector<32x128xbf16>, vector<8x128xf32> -> vector<8x128xf32>
    %147 = arith.addf %144, %146 : vector<8x128xf32>
    %148 = arith.negf %147 : vector<8x128xf32>
    %149 = math.exp %148 : vector<8x128xf32>
    %cst_30 = arith.constant 1.000000e+00 : f32
    %150 = vector.broadcast %cst_30 : f32 to vector<8x128xf32>
    %151 = arith.addf %150, %149 : vector<8x128xf32>
    %152 = arith.divf %150, %151 : vector<8x128xf32>
    %153 = vector.extract_strided_slice %152 {offsets = [0, 0], sizes = [8, 32], strides = [1, 1]} : vector<8x128xf32> to vector<8x32xf32>
    %154 = vector.extract_strided_slice %152 {offsets = [0, 32], sizes = [8, 32], strides = [1, 1]} : vector<8x128xf32> to vector<8x32xf32>
    %155 = vector.extract_strided_slice %152 {offsets = [0, 64], sizes = [8, 32], strides = [1, 1]} : vector<8x128xf32> to vector<8x32xf32>
    %cst_31 = arith.constant 2.000000e+00 : f32
    %156 = vector.broadcast %cst_31 : f32 to vector<8x32xf32>
    %157 = arith.mulf %156, %155 : vector<8x32xf32>
    %cst_32 = arith.constant 1.000000e+00 : f32
    %158 = vector.broadcast %cst_32 : f32 to vector<8x32xf32>
    %159 = arith.subf %157, %158 : vector<8x32xf32>
    %160 = vector.extract_strided_slice %152 {offsets = [0, 96], sizes = [8, 32], strides = [1, 1]} : vector<8x128xf32> to vector<8x32xf32>
    %161 = arith.mulf %154, %141 : vector<8x32xf32>
    %162 = arith.mulf %153, %159 : vector<8x32xf32>
    %163 = arith.addf %161, %162 : vector<8x32xf32>
    %164 = math.tanh %163 : vector<8x32xf32>
    %165 = arith.mulf %160, %164 : vector<8x32xf32>
    %166 = vector.extract_strided_slice %9 {offsets = [56, 0], sizes = [8, 128], strides = [1, 1]} : vector<64x128xf32> to vector<8x128xf32>
    %167 = arith.truncf %165 : vector<8x32xf32> to vector<8x32xbf16>
    %cst_33 = arith.constant dense<0.000000e+00> : vector<8x128xf32>
    %168 = tpu.matmul %167, %4, %cst_33 {dimension_numbers = #tpu.dot_dimension_numbers<[1], [0], [0], [1], [0, 0, 1, 1], [], []>} : vector<8x32xbf16>, vector<32x128xbf16>, vector<8x128xf32> -> vector<8x128xf32>
    %169 = arith.addf %166, %168 : vector<8x128xf32>
    %170 = arith.negf %169 : vector<8x128xf32>
    %171 = math.exp %170 : vector<8x128xf32>
    %cst_34 = arith.constant 1.000000e+00 : f32
    %172 = vector.broadcast %cst_34 : f32 to vector<8x128xf32>
    %173 = arith.addf %172, %171 : vector<8x128xf32>
    %174 = arith.divf %172, %173 : vector<8x128xf32>
    %175 = vector.extract_strided_slice %174 {offsets = [0, 0], sizes = [8, 32], strides = [1, 1]} : vector<8x128xf32> to vector<8x32xf32>
    %176 = vector.extract_strided_slice %174 {offsets = [0, 32], sizes = [8, 32], strides = [1, 1]} : vector<8x128xf32> to vector<8x32xf32>
    %177 = vector.extract_strided_slice %174 {offsets = [0, 64], sizes = [8, 32], strides = [1, 1]} : vector<8x128xf32> to vector<8x32xf32>
    %cst_35 = arith.constant 2.000000e+00 : f32
    %178 = vector.broadcast %cst_35 : f32 to vector<8x32xf32>
    %179 = arith.mulf %178, %177 : vector<8x32xf32>
    %cst_36 = arith.constant 1.000000e+00 : f32
    %180 = vector.broadcast %cst_36 : f32 to vector<8x32xf32>
    %181 = arith.subf %179, %180 : vector<8x32xf32>
    %182 = vector.extract_strided_slice %174 {offsets = [0, 96], sizes = [8, 32], strides = [1, 1]} : vector<8x128xf32> to vector<8x32xf32>
    %183 = arith.mulf %176, %163 : vector<8x32xf32>
    %184 = arith.mulf %175, %181 : vector<8x32xf32>
    %185 = arith.addf %183, %184 : vector<8x32xf32>
    %186 = math.tanh %185 : vector<8x32xf32>
    %187 = arith.mulf %182, %186 : vector<8x32xf32>
    %188 = tpu.concatenate %33, %55, %77, %99, %121, %143, %165, %187 in 1 : vector<8x32xf32>, vector<8x32xf32>, vector<8x32xf32>, vector<8x32xf32>, vector<8x32xf32>, vector<8x32xf32>, vector<8x32xf32>, vector<8x32xf32> -> vector<8x256xf32>
    %c0_37 = arith.constant 0 : index
    %c0_38 = arith.constant 0 : index
    %189 = vector.load %arg2[%c0_37, %c0_38] : memref<8x256xf32, #tpu.memory_space<vmem>>, vector<8x256xf32>
    tpu.vector_store %arg2[%c0_37, %c0_38], %188 {strides = array<i32>} : memref<8x256xf32, #tpu.memory_space<vmem>>, vector<8x256xf32>,
    return
  }
}

</mosaic_0001>

<bundles_post_ra>
// kernel: vanilla_lstm_forward.1
= control target key start
LH: loop header
LB: loop body
LE: loop exit
PB: predicated region body
PF: predicated region fallthrough
CT: control target
= control target key end

     0   :  { %v943_v0 = vmov 0.0   ;;  %vm944_vm0 = vmmov 0   ;;  %vm54_vm1 = vcmask 130048   ;;  %v945_v12 = vmov 0   ;;  %s947_s27 = smov 32   ;;  %s1160_s1 = inlined_call_operand.vmem [shape: f32[56,128], index: 1, kind: input, shape index: {}]   ;;  %s1161_s0 = inlined_call_operand.vmem [shape: bf16[64,16], index: 0, kind: input, shape index: {}]   ;;  %s1162_s2 = inlined_call_operand.vmem [shape: f32[8,256], index: 2, kind: output, shape index: {}]  }
   0x1   :  { %821 = vmatprep.subr.bf16.mxu1 %v943_v0  ;;  %v12_v1 = vld [vmem:[%s1160_s1] sm:$0xff]  ;;  %v13_v2 = vld [vmem:[%s1160_s1 + $0x8] sm:$0xff]  ;;  %v14_v3 = vld [vmem:[%s1160_s1 + $0x10] sm:$0xff]  ;;  %825 = vmatprep.mubr.msk.bf16.mxu1 %vm944_vm0, %v943_v0  ;;  %v30_v13 = vlaneseq  ;;  %vm132_vm2 = vcmask 261120   ;;  %vm738_vm3 = vcmask 523264   ;;  %vm740_vm4 = vcmask 785408  }
   0x2   :  { %v15_v4 = vld [vmem:[%s1160_s1 + $0x18] sm:$0xff]  ;;  %v16_v5 = vld [vmem:[%s1160_s1 + $0x20] sm:$0xff]  ;;  %v17_v6 = vld [vmem:[%s1160_s1 + $0x28] sm:$0xff]  ;;  %v19_v7 = vpack.c.bf16 %v13_v2, %v12_v1 }
   0x3   :  { %v985_v8 = vpack.c.bf16 %v15_v4, %v14_v3  ;;  %v891_v9 = vld [vmem:[%s1161_s0] sm:$0xff]   ;;  %v990_v10 = vpack.c.bf16 %v17_v6, %v16_v5  ;;  %v892_v11 = vld [vmem:[%s1161_s0 + $0x8] sm:$0xff]   ;;  %v31_v14 = vshrl.u32 %v30_v13, 7  ;;  %v18_v16 = vld [vmem:[%s1160_s1 + $0x30] sm:$0xff]  ;;  %s946_s1 = smov 64  }
   0x4   :  { %811 = vmatprep.subr.bf16.mxu0 %v19_v7  ;;  %813 = vmatprep.mubr.msk.bf16.mxu0 %vm54_vm1, %v891_v9  ;;  %v893_v61 = vld [vmem:[%s1161_s0 + $0x10] sm:$0xff]   ;;  %v894_v62 = vld [vmem:[%s1161_s0 + $0x18] sm:$0xff]   ;;  %s948_s0 = smov 96  }
   0x5   :  { %822 = vmatpush3.bf16.msra.mxu1 %v985_v8  ;;  %812 = vmatpush3.bf16.msra.mxu0 %v19_v7  ;;  %v32_v15 = vsub.s32 0, %v31_v14 }
   0x6   :  { %823 = vmatprep.subr.bf16.mxu1 %v943_v0  ;;  %837 = vmatprep.subr.bf16.mxu0 %v943_v0 }
   0x7   :  { %v1015_v17 = vrot.slane %v18_v16, %v32_v15 }
   0x8   :  { %814 = vmatmul.mubr.msk.bf16.vlgmr.msra.gmra.mrb[0].mxu0 %vm54_vm1, %v892_v11 }
   0x9   :  { %824 = vmatpush3.bf16.msra.mxu1 %v990_v10  ;;  %838 = vmatpush3.bf16.msra.mxu0 %v985_v8 }
   0xa   :  { %829 = vmatprep.subr.bf16.mxu1 %v943_v0  ;;  %839 = vmatprep.subr.bf16.mxu0 %v943_v0 }
   0xb   :  { %817 = vmatprep.mubr.msk.bf16.mxu0 %vm54_vm1, %v893_v61 }
   0xc   :  { %826 = vmatmul.mubr.bf16.vlgmr.msra.gmra.mrb[0].mxu1 %v945_v12 }
   0xd   :  { %830 = vmatpush3.bf16.msra.mxu1 %v985_v8  ;;  %833 = vmatprep.mubr.msk.bf16.mxu1 %vm944_vm0, %v943_v0 }
   0xe   :  { %831 = vmatprep.subr.bf16.mxu1 %v943_v0  ;;  %840 = vmatpush3.bf16.msra.mxu0 %v990_v10 }
   0xf   :  { %853 = vmatprep.subr.bf16.mxu0 %v943_v0 }
  0x10   :  { %818 = vmatmul.mubr.msk.bf16.gmra.mrb[4].mxu0 %vm54_vm1, %v894_v62 }
  0x11   :  { %832 = vmatpush3.bf16.msra.mxu1 %v990_v10  ;;  %841 = vmatprep.mubr.msk.bf16.mxu0 %vm944_vm0, %v943_v0 }
  0x12   :  { %845 = vmatprep.subr.bf16.mxu1 %v943_v0 }
  0xdb   :  { %v1017_v18 = vpop.f32.mrb[0].mxu0 }
  0xdc   :  { %v101_v19 = vpop.f32.mrb[1].mxu0  ;;  %v110_v11 = vadd.f32 %v1017_v18, %v1015_v17 }
  0xdd   :  { %v102_v20 = vadd.f32 %v101_v19, %v1015_v17  ;;  %v1020_v21 = vpop.f32.mrb[2].mxu0 }
  0xde   :  { %v104_v22 = vpop.f32.mrb[3].mxu0 }
  0xdf   :  { %v170_v23 = vpop.f32.mrb[0].mxu1  ;;  %v105_v44 = vadd.f32 %v104_v22, %v1015_v17 }
  0xe0   :  { %v176_v24 = vadd.f32 %v170_v23, %v102_v20  ;;  %v827_v25 = vpop.f32.mrb[1].mxu1 }
  0xe1   :  { %v173_v26 = vpop.f32.mrb[2].mxu1 }
  0xe2   :  { %v759_v27 = vmul.f32 -1.442695, %v176_v24  ;;  %v828_v28 = vpop.f32.mrb[3].mxu1 }
  0xe3   :  { %v1056_v4 = vpop.f32.mrb[4].mxu0 }
  0xe4   :  { %895 = vpow2.f32 %v759_v27  ;;  %v1058_v5 = vpop.f32.mrb[5].mxu0 }
  0xe5   :  { %v1060_v6 = vpop.f32.mrb[6].mxu0 }
  0xe6   :  { %v1062_v7 = vpop.f32.mrb[7].mxu0 }
  0xee   :  { %v896_v29 = vpop.eup %895 }
  0xef   :  { %v180_v30 = vadd.f32 1.0, %v896_v29 }
  0xf1   :  { %897 = vrcp.f32 %v180_v30 }
  0xfb   :  { %v898_v31 = vpop.eup %897 }
  0xfc   :  { %v183_v32 = vmul.f32 2.0, %v898_v31  ;;  %v185_v36 = vmul.f32 0.0, %v898_v31 }
  0xfe   :  { %v760_v33 = vadd.f32 -1.0, %v183_v32 }
 0x100   :  { %187 = vrot.lane.b32.xlu0 %v760_v33, %s946_s1 }
 0x172   :  { %v188_v34 = vpop.permute.xlu0 %187 }
 0x173   :  { %v190_v35 = vmul.f32 %v898_v31, %v188_v34 }
 0x175   :  { %192 = vrot.lane.b32.xlu0 %v190_v35, %s947_s27  ;;  %v113_v35 = vadd.f32 %v1020_v21, %v1015_v17 }
 0x1e7   :  { %v193_v37 = vpop.permute.xlu0 %192 }
 0x1e8   :  { %v195_v38 = vadd.f32 %v193_v37, %v185_v36 }
 0x1ea   :  { %899 = vtanh.f32 %v195_v38 }
 0x1f4   :  { %v900_v39 = vpop.eup %899 }
 0x1f5   :  { %198 = vrot.lane.b32.xlu1 %v900_v39, %s946_s1 }
 0x267   :  { %v199_v40 = vpop.permute.xlu1 %198 }
 0x268   :  { %v1025_v41 = vmul.f32 %v898_v31, %v199_v40 }
 0x26a   :  { %v202_v42 = vpack.c.bf16 %v1025_v41, %v1025_v41 }
 0x26c   :  { %204 = vrot.lane.b32.xlu1 %v202_v42, %s947_s27 }
 0x2de   :  { %v205_v43 = vpop.permute.xlu1 %204 }
 0x2df   :  { %834 = vmatmul.mubr.msk.bf16.vlgmr.msra.gmra.mrb[4].mxu1 %vm132_vm2, %v205_v43 }
 0x2e0   :  { %846 = vmatpush3.bf16.msra.mxu1 %v985_v8  ;;  %849 = vmatprep.mubr.msk.bf16.mxu1 %vm944_vm0, %v943_v0 }
 0x2e1   :  { %847 = vmatprep.subr.bf16.mxu1 %v943_v0 }
 0x2e4   :  { %848 = vmatpush3.bf16.msra.mxu1 %v990_v10 }
 0x2e5   :  { %861 = vmatprep.subr.bf16.mxu1 %v943_v0 }
 0x3b2   :  { %v243_v45 = vpop.f32.mrb[4].mxu1 }
 0x3b3   :  { %v249_v46 = vadd.f32 %v243_v45, %v105_v44  ;;  %v835_v47 = vpop.f32.mrb[5].mxu1 }
 0x3b4   :  { %v246_v48 = vpop.f32.mrb[6].mxu1 }
 0x3b5   :  { %v762_v49 = vmul.f32 -1.442695, %v249_v46  ;;  %v836_v50 = vpop.f32.mrb[7].mxu1 }
 0x3b7   :  { %901 = vpow2.f32 %v762_v49 }
 0x3c1   :  { %v902_v51 = vpop.eup %901 }
 0x3c2   :  { %v253_v52 = vadd.f32 1.0, %v902_v51 }
 0x3c4   :  { %903 = vrcp.f32 %v253_v52 }
 0x3ce   :  { %v904_v53 = vpop.eup %903 }
 0x3cf   :  { %v256_v54 = vmul.f32 2.0, %v904_v53  ;;  %v258_v58 = vmul.f32 %v904_v53, %v195_v38 }
 0x3d1   :  { %v763_v55 = vadd.f32 -1.0, %v256_v54 }
 0x3d3   :  { %260 = vrot.lane.b32.xlu0 %v763_v55, %s946_s1 }
 0x445   :  { %v261_v56 = vpop.permute.xlu0 %260 }
 0x446   :  { %v263_v57 = vmul.f32 %v904_v53, %v261_v56 }
 0x448   :  { %265 = vrot.lane.b32.xlu1 %v263_v57, %s947_s27  ;;  %v118_v57 = vadd.f32 %v1058_v5, %v1015_v17 }
 0x4ba   :  { %v266_v59 = vpop.permute.xlu1 %265 }
 0x4bb   :  { %v268_v60 = vadd.f32 %v266_v59, %v258_v58 }
 0x4bd   :  { %905 = vtanh.f32 %v268_v60 }
 0x4c7   :  { %v906_v63 = vpop.eup %905 }
 0x4c8   :  { %271 = vrot.lane.b32.xlu0 %v906_v63, %s946_s1 }
 0x53a   :  { %v272_v1 = vpop.permute.xlu0 %271 }
 0x53b   :  { %v1051_v2 = vmul.f32 %v904_v53, %v272_v1 }
 0x53d   :  { %v275_v3 = vpack.c.bf16 %v1051_v2, %v1051_v2 }
 0x53f   :  { %277 = vrot.lane.b32.xlu1 %v275_v3, %s947_s27 }
 0x5b1   :  { %v278_v9 = vpop.permute.xlu1 %277 }
 0x5b2   :  { %842 = vmatmul.mubr.msk.bf16.vlgmr.msra.gmra.mrb[8].mxu0 %vm132_vm2, %v278_v9 }
 0x5b3   :  { %854 = vmatpush3.bf16.msra.mxu0 %v985_v8  ;;  %857 = vmatprep.mubr.msk.bf16.mxu0 %vm944_vm0, %v943_v0 }
 0x5b4   :  { %855 = vmatprep.subr.bf16.mxu0 %v943_v0 }
 0x5b7   :  { %856 = vmatpush3.bf16.msra.mxu0 %v990_v10 }
 0x5b8   :  { %869 = vmatprep.subr.bf16.mxu0 %v943_v0 }
 0x685   :  { %v316_v12 = vpop.f32.mrb[8].mxu0 }
 0x686   :  { %v322_v13 = vadd.f32 %v316_v12, %v110_v11  ;;  %v843_v14 = vpop.f32.mrb[9].mxu0 }
 0x687   :  { %v319_v15 = vpop.f32.mrb[10].mxu0 }
 0x688   :  { %v765_v16 = vmul.f32 -1.442695, %v322_v13  ;;  %v844_v19 = vpop.f32.mrb[11].mxu0 }
 0x68a   :  { %907 = vpow2.f32 %v765_v16 }
 0x694   :  { %v908_v20 = vpop.eup %907 }
 0x695   :  { %v326_v22 = vadd.f32 1.0, %v908_v20 }
 0x697   :  { %909 = vrcp.f32 %v326_v22 }
 0x6a1   :  { %v910_v23 = vpop.eup %909 }
 0x6a2   :  { %v329_v24 = vmul.f32 2.0, %v910_v23  ;;  %v331_v18 = vmul.f32 %v910_v23, %v268_v60 }
 0x6a4   :  { %v766_v25 = vadd.f32 -1.0, %v329_v24 }
 0x6a6   :  { %333 = vrot.lane.b32.xlu0 %v766_v25, %s946_s1  ;;  %v121_v25 = vadd.f32 %v1062_v7, %v1015_v17 }
 0x718   :  { %v334_v26 = vpop.permute.xlu0 %333 }
 0x719   :  { %v336_v27 = vmul.f32 %v910_v23, %v334_v26 }
 0x71b   :  { %338 = vrot.lane.b32.xlu1 %v336_v27, %s947_s27 }
 0x78d   :  { %v339_v28 = vpop.permute.xlu1 %338 }
 0x78e   :  { %v341_v29 = vadd.f32 %v339_v28, %v331_v18 }
 0x790   :  { %911 = vtanh.f32 %v341_v29 }
 0x79a   :  { %v912_v30 = vpop.eup %911 }
 0x79b   :  { %344 = vrot.lane.b32.xlu0 %v912_v30, %s946_s1 }
 0x80d   :  { %v345_v31 = vpop.permute.xlu0 %344 }
 0x80e   :  { %v1076_v32 = vmul.f32 %v910_v23, %v345_v31 }
 0x810   :  { %v348_v33 = vpack.c.bf16 %v1076_v32, %v1076_v32 }
 0x812   :  { %350 = vrot.lane.b32.xlu1 %v348_v33, %s947_s27 }
 0x884   :  { %v351_v34 = vpop.permute.xlu1 %350 }
 0x885   :  { %850 = vmatmul.mubr.msk.bf16.vlgmr.msra.gmra.mrb[8].mxu1 %vm132_vm2, %v351_v34 }
 0x886   :  { %862 = vmatpush3.bf16.msra.mxu1 %v985_v8  ;;  %865 = vmatprep.mubr.msk.bf16.mxu1 %vm944_vm0, %v943_v0 }
 0x887   :  { %863 = vmatprep.subr.bf16.mxu1 %v943_v0 }
 0x88a   :  { %864 = vmatpush3.bf16.msra.mxu1 %v990_v10 }
 0x88b   :  { %877 = vmatprep.subr.bf16.mxu1 %v943_v0 }
 0x958   :  { %v389_v36 = vpop.f32.mrb[8].mxu1 }
 0x959   :  { %v395_v37 = vadd.f32 %v389_v36, %v113_v35  ;;  %v851_v38 = vpop.f32.mrb[9].mxu1 }
 0x95a   :  { %v392_v39 = vpop.f32.mrb[10].mxu1 }
 0x95b   :  { %v768_v40 = vmul.f32 -1.442695, %v395_v37  ;;  %v852_v42 = vpop.f32.mrb[11].mxu1 }
 0x95d   :  { %913 = vpow2.f32 %v768_v40 }
 0x967   :  { %v914_v43 = vpop.eup %913 }
 0x968   :  { %v399_v44 = vadd.f32 1.0, %v914_v43 }
 0x96a   :  { %915 = vrcp.f32 %v399_v44  ;;  %v126_v44 = vadd.f32 %v1056_v4, %v1015_v17 }
 0x974   :  { %v916_v45 = vpop.eup %915 }
 0x975   :  { %v402_v46 = vmul.f32 2.0, %v916_v45  ;;  %v404_v21 = vmul.f32 %v916_v45, %v341_v29 }
 0x977   :  { %v769_v47 = vadd.f32 -1.0, %v402_v46 }
 0x979   :  { %406 = vrot.lane.b32.xlu0 %v769_v47, %s946_s1 }
 0x9eb   :  { %v407_v48 = vpop.permute.xlu0 %406 }
 0x9ec   :  { %v409_v49 = vmul.f32 %v916_v45, %v407_v48 }
 0x9ee   :  { %411 = vrot.lane.b32.xlu1 %v409_v49, %s947_s27 }
 0xa60   :  { %v412_v50 = vpop.permute.xlu1 %411 }
 0xa61   :  { %v414_v51 = vadd.f32 %v412_v50, %v404_v21 }
 0xa63   :  { %917 = vtanh.f32 %v414_v51 }
 0xa6d   :  { %v918_v52 = vpop.eup %917 }
 0xa6e   :  { %417 = vrot.lane.b32.xlu0 %v918_v52, %s946_s1 }
 0xae0   :  { %v418_v53 = vpop.permute.xlu0 %417 }
 0xae1   :  { %v1093_v54 = vmul.f32 %v916_v45, %v418_v53 }
 0xae3   :  { %v421_v55 = vpack.c.bf16 %v1093_v54, %v1093_v54 }
 0xae5   :  { %423 = vrot.lane.b32.xlu1 %v421_v55, %s947_s27 }
 0xb57   :  { %v424_v56 = vpop.permute.xlu1 %423 }
 0xb58   :  { %858 = vmatmul.mubr.msk.bf16.vlgmr.msra.gmra.mrb[12].mxu0 %vm132_vm2, %v424_v56 }
 0xb59   :  { %870 = vmatpush3.bf16.msra.mxu0 %v985_v8  ;;  %873 = vmatprep.mubr.msk.bf16.mxu0 %vm944_vm0, %v943_v0 }
 0xb5a   :  { %871 = vmatprep.subr.bf16.mxu0 %v943_v0 }
 0xb5d   :  { %872 = vmatpush3.bf16.msra.mxu0 %v990_v10 }
 0xc2b   :  { %v462_v58 = vpop.f32.mrb[12].mxu0 }
 0xc2c   :  { %v468_v59 = vadd.f32 %v462_v58, %v118_v57  ;;  %v859_v60 = vpop.f32.mrb[13].mxu0 }
 0xc2d   :  { %v465_v61 = vpop.f32.mrb[14].mxu0 }
 0xc2e   :  { %v771_v62 = vmul.f32 -1.442695, %v468_v59  ;;  %v860_v63 = vpop.f32.mrb[15].mxu0 }
 0xc30   :  { %919 = vpow2.f32 %v771_v62 }
 0xc3a   :  { %v920_v1 = vpop.eup %919 }
 0xc3b   :  { %v472_v3 = vadd.f32 1.0, %v920_v1 }
 0xc3d   :  { %921 = vrcp.f32 %v472_v3  ;;  %v129_v3 = vadd.f32 %v1060_v6, %v1015_v17 }
 0xc47   :  { %v922_v9 = vpop.eup %921 }
 0xc48   :  { %v475_v11 = vmul.f32 2.0, %v922_v9  ;;  %v477_v5 = vmul.f32 %v922_v9, %v414_v51 }
 0xc4a   :  { %v772_v12 = vadd.f32 -1.0, %v475_v11 }
 0xc4c   :  { %479 = vrot.lane.b32.xlu0 %v772_v12, %s946_s1 }
 0xcbe   :  { %v480_v13 = vpop.permute.xlu0 %479 }
 0xcbf   :  { %v482_v14 = vmul.f32 %v922_v9, %v480_v13 }
 0xcc1   :  { %484 = vrot.lane.b32.xlu1 %v482_v14, %s947_s27 }
 0xd33   :  { %v485_v15 = vpop.permute.xlu1 %484 }
 0xd34   :  { %v487_v16 = vadd.f32 %v485_v15, %v477_v5 }
 0xd36   :  { %923 = vtanh.f32 %v487_v16 }
 0xd40   :  { %v924_v19 = vpop.eup %923 }
 0xd41   :  { %490 = vrot.lane.b32.xlu0 %v924_v19, %s946_s1 }
 0xdb3   :  { %v491_v20 = vpop.permute.xlu0 %490 }
 0xdb4   :  { %v1109_v22 = vmul.f32 %v922_v9, %v491_v20 }
 0xdb6   :  { %v494_v23 = vpack.c.bf16 %v1109_v22, %v1109_v22 }
 0xdb8   :  { %496 = vrot.lane.b32.xlu1 %v494_v23, %s947_s27 }
 0xe2a   :  { %v497_v24 = vpop.permute.xlu1 %496 }
 0xe2b   :  { %866 = vmatmul.mubr.msk.bf16.vlgmr.msra.gmra.mrb[12].mxu1 %vm132_vm2, %v497_v24 }
 0xe2c   :  { %878 = vmatpush3.bf16.msra.mxu1 %v985_v8  ;;  %881 = vmatprep.mubr.msk.bf16.mxu1 %vm944_vm0, %v943_v0 }
 0xe2d   :  { %879 = vmatprep.subr.bf16.mxu1 %v943_v0 }
 0xe30   :  { %880 = vmatpush3.bf16.msra.mxu1 %v990_v10 }
 0xefe   :  { %v535_v26 = vpop.f32.mrb[12].mxu1 }
 0xeff   :  { %v541_v27 = vadd.f32 %v535_v26, %v121_v25  ;;  %v867_v18 = vpop.f32.mrb[13].mxu1 }
 0xf00   :  { %v538_v28 = vpop.f32.mrb[14].mxu1 }
 0xf01   :  { %v774_v29 = vmul.f32 -1.442695, %v541_v27  ;;  %v868_v30 = vpop.f32.mrb[15].mxu1 }
 0xf03   :  { %925 = vpow2.f32 %v774_v29 }
 0xf0d   :  { %v926_v31 = vpop.eup %925 }
 0xf0e   :  { %v545_v33 = vadd.f32 1.0, %v926_v31 }
 0xf10   :  { %927 = vrcp.f32 %v545_v33 }
 0xf1a   :  { %v928_v8 = vpop.eup %927 }
 0xf1b   :  { %v548_v34 = vmul.f32 2.0, %v928_v8  ;;  %v550_v7 = vmul.f32 %v928_v8, %v487_v16 }
 0xf1d   :  { %v775_v35 = vadd.f32 -1.0, %v548_v34 }
 0xf1f   :  { %552 = vrot.lane.b32.xlu0 %v775_v35, %s946_s1 }
 0xf91   :  { %v553_v0 = vpop.permute.xlu0 %552 }
 0xf92   :  { %v555_v10 = vmul.f32 %v928_v8, %v553_v0 }
 0xf94   :  { %557 = vrot.lane.b32.xlu1 %v555_v10, %s947_s27 }
0x1006   :  { %v558_v36 = vpop.permute.xlu1 %557 }
0x1007   :  { %v560_v37 = vadd.f32 %v558_v36, %v550_v7 }
0x1009   :  { %929 = vtanh.f32 %v560_v37 }
0x1013   :  { %v930_v38 = vpop.eup %929 }
0x1014   :  { %563 = vrot.lane.b32.xlu0 %v930_v38, %s946_s1 }
0x1086   :  { %v564_v39 = vpop.permute.xlu0 %563 }
0x1087   :  { %v566_v40 = vmul.f32 %v928_v8, %v564_v39 }
0x1089   :  { %v567_v42 = vpack.c.bf16 %v566_v40, %v566_v40 }
0x108b   :  { %569 = vrot.lane.b32.xlu1 %v567_v42, %s947_s27 }
0x10fd   :  { %v570_v43 = vpop.permute.xlu1 %569 }
0x10fe   :  { %874 = vmatmul.mubr.msk.bf16.vlgmr.msra.gmra.mrb[16].mxu0 %vm132_vm2, %v570_v43 }
0x11d1   :  { %v608_v45 = vpop.f32.mrb[16].mxu0 }
0x11d2   :  { %v614_v46 = vadd.f32 %v608_v45, %v126_v44  ;;  %v875_v47 = vpop.f32.mrb[17].mxu0 }
0x11d3   :  { %v611_v48 = vpop.f32.mrb[18].mxu0 }
0x11d4   :  { %v777_v49 = vmul.f32 -1.442695, %v614_v46  ;;  %v876_v21 = vpop.f32.mrb[19].mxu0 }
0x11d6   :  { %931 = vpow2.f32 %v777_v49 }
0x11e0   :  { %v932_v50 = vpop.eup %931 }
0x11e1   :  { %v618_v51 = vadd.f32 1.0, %v932_v50 }
0x11e3   :  { %933 = vrcp.f32 %v618_v51 }
0x11ed   :  { %v934_v52 = vpop.eup %933 }
0x11ee   :  { %v621_v53 = vmul.f32 2.0, %v934_v52  ;;  %v623_v4 = vmul.f32 %v934_v52, %v560_v37 }
0x11f0   :  { %v778_v55 = vadd.f32 -1.0, %v621_v53 }
0x11f2   :  { %625 = vrot.lane.b32.xlu0 %v778_v55, %s946_s1 }
0x1264   :  { %v626_v56 = vpop.permute.xlu0 %625 }
0x1265   :  { %v628_v57 = vmul.f32 %v934_v52, %v626_v56 }
0x1267   :  { %630 = vrot.lane.b32.xlu1 %v628_v57, %s947_s27 }
0x12d9   :  { %v631_v58 = vpop.permute.xlu1 %630 }
0x12da   :  { %v633_v59 = vadd.f32 %v631_v58, %v623_v4 }
0x12dc   :  { %935 = vtanh.f32 %v633_v59 }
0x12e6   :  { %v936_v60 = vpop.eup %935 }
0x12e7   :  { %636 = vrot.lane.b32.xlu0 %v936_v60, %s946_s1 }
0x1359   :  { %v637_v61 = vpop.permute.xlu0 %636 }
0x135a   :  { %v639_v62 = vmul.f32 %v934_v52, %v637_v61 }
0x135c   :  { %v640_v63 = vpack.c.bf16 %v639_v62, %v639_v62 }
0x135e   :  { %642 = vrot.lane.b32.xlu1 %v640_v63, %s947_s27 }
0x13d0   :  { %v643_v1 = vpop.permute.xlu1 %642 }
0x13d1   :  { %882 = vmatmul.mubr.msk.bf16.vlgmr.msra.gmra.mrb[16].mxu1 %vm132_vm2, %v643_v1 }
0x14a4   :  { %v681_v9 = vpop.f32.mrb[16].mxu1 }
0x14a5   :  { %v687_v11 = vadd.f32 %v681_v9, %v129_v3  ;;  %v883_v12 = vpop.f32.mrb[17].mxu1 }
0x14a6   :  { %v684_v13 = vpop.f32.mrb[18].mxu1 }
0x14a7   :  { %v780_v14 = vmul.f32 -1.442695, %v687_v11  ;;  %v884_v5 = vpop.f32.mrb[19].mxu1 }
0x14a9   :  { %937 = vpow2.f32 %v780_v14 }
0x14b3   :  { %v938_v15 = vpop.eup %937 }
0x14b4   :  { %v691_v16 = vadd.f32 1.0, %v938_v15 }
0x14b6   :  { %939 = vrcp.f32 %v691_v16 }
0x14c0   :  { %v940_v19 = vpop.eup %939 }
0x14c1   :  { %v694_v20 = vmul.f32 2.0, %v940_v19  ;;  %v696_v24 = vmul.f32 %v940_v19, %v633_v59 }
0x14c3   :  { %v781_v23 = vadd.f32 -1.0, %v694_v20 }
0x14c5   :  { %698 = vrot.lane.b32.xlu0 %v781_v23, %s946_s1 }
0x14c9   :  { %718 = vrot.lane.b32.xlu0 %v1051_v2, %s946_s1 }
0x14cd   :  { %730 = vrot.lane.b32.xlu0 %v566_v40, %s946_s1 }
0x1537   :  { %v699_v17 = vpop.permute.xlu0 %698 }
0x1538   :  { %v701_v6 = vmul.f32 %v940_v19, %v699_v17 }
0x153a   :  { %703 = vrot.lane.b32.xlu1 %v701_v6, %s947_s27 }
0x153b   :  { %v719_v18 = vpop.permute.xlu0 %718 }
0x153e   :  { %714 = vrot.lane.b32.xlu1 %v1025_v41, %s947_s27 }
0x1542   :  { %726 = vrot.lane.b32.xlu1 %v1109_v22, %s947_s27 }
0x1546   :  { %722 = vrot.lane.b32.xlu1 %v1076_v32, %s948_s0  ;;  %v731_v32 = vpop.permute.xlu0 %730 }
0x15ac   :  { %v704_v25 = vpop.permute.xlu1 %703 }
0x15ad   :  { %v706_v26 = vadd.f32 %v704_v25, %v696_v24 }
0x15af   :  { %941 = vtanh.f32 %v706_v26 }
0x15b0   :  { %v715_v2 = vpop.permute.xlu1 %714 }
0x15b1   :  { %v737_v28 = vsel %vm132_vm2, %v715_v2, %v719_v18 }
0x15b4   :  { %v727_v27 = vpop.permute.xlu1 %726 }
0x15b5   :  { %v742_v33 = vsel %vm132_vm2, %v727_v27, %v731_v32 }
0x15b8   :  { %v723_v29 = vpop.permute.xlu1 %722 }
0x15b9   :  { %v942_v30 = vpop.eup %941  ;;  %v739_v41 = vsel %vm738_vm3, %v737_v28, %v723_v29 }
0x15ba   :  { %v741_v22 = vsel %vm740_vm4, %v739_v41, %v1093_v54  ;;  %709 = vrot.lane.b32.xlu0 %v942_v30, %s946_s1 }
0x15bb   :  { %745 = vst [vmem:[%s1162_s2] sm:$0xff] %v741_v22 }
0x15be   :  { %734 = vrot.lane.b32.xlu0 %v639_v62, %s948_s0 }
0x162c   :  { %v710_v31 = vpop.permute.xlu0 %709 }
0x162d   :  { %v712_v8 = vmul.f32 %v940_v19, %v710_v31 }
0x1630   :  { %v735_v34 = vpop.permute.xlu0 %734 }
0x1631   :  { %v743_v35 = vsel %vm738_vm3, %v742_v33, %v735_v34 }
0x1632   :  { %v744_v0 = vsel %vm740_vm4, %v743_v35, %v712_v8 }
0x1633   :  { %746 = vst [vmem:[%s1162_s2 + $0x8] sm:$0xff] %v744_v0 }

</bundles_post_ra>
